<compile_context>
chip_gen: v7x
topology: tpu7x:2x2x1
jax: 0.10.0
libtpu: 0.0.40
codegen_flags: <defaults>
</compile_context>

<pallas_src>
import functools

import jax
import jax.numpy as jnp
from jax import lax
from jax.experimental import pallas as pl
from jax.experimental.pallas import tpu as pltpu


def pdp_context_kernel(x_ref, w_ref, out_ref):
    # x_ref:   (TB, D_in)   bf16 gathered current-node embeddings
    # w_ref:   (D_out, D_in) bf16 nn.Linear weight (untransposed)
    # out_ref: (TB, D_out)  projected context embedding tile
    # y = x @ W.T : contract x dim 1 with w dim 1 (transpose folded into the MXU op)
    out_ref[...] = lax.dot_general(
        x_ref[...],
        w_ref[...],
        dimension_numbers=(((1,), (1,)), ((), ())),
        preferred_element_type=jnp.float32,
    ).astype(out_ref.dtype)


@functools.partial(jax.jit, static_argnames=("block_b",))
def pdp_context_forward(embeddings, current_node, w, *, block_b=256):
    """embeddings: (B, N, D); current_node: (B,) int; w: (D_out, D_in) Linear weight."""
    B, N, D = embeddings.shape
    D_out = w.shape[0]

    # Gather the current-node embedding per batch row (cheap: only B*D elements),
    # then cast to bf16 so the kernel feeds the MXU its native dtype.
    idx = current_node.astype(jnp.int32).reshape(B, 1, 1)
    gathered = jnp.take_along_axis(embeddings, idx, axis=1).reshape(B, D)
    x = gathered.astype(jnp.bfloat16)
    w_b = w.astype(jnp.bfloat16)

    tb = min(block_b, B)  # full-array block when B < block_b (satisfies tile rules)
    grid = (pl.cdiv(B, tb),)

    grid_spec = pltpu.PrefetchScalarGridSpec(
        num_scalar_prefetch=0,
        grid=grid,
        in_specs=[
            # batch tile of gathered rows
            pl.BlockSpec((tb, D), lambda i: (i, 0)),
            # grid-invariant weight: constant index_map keeps it resident in VMEM
            pl.BlockSpec((D_out, D), lambda i: (0, 0)),
        ],
        out_specs=pl.BlockSpec((tb, D_out), lambda i: (i, 0)),
    )

    return pl.pallas_call(
        pdp_context_kernel,
        out_shape=jax.ShapeDtypeStruct((B, D_out), embeddings.dtype),
        grid_spec=grid_spec,
        compiler_params=pltpu.CompilerParams(
            dimension_semantics=("parallel",),
        ),
    )(x, w_b)


if __name__ == "__main__":
    key = jax.random.PRNGKey(0)
    B, N, D = 2, 8, 128  # batch, num nodes (seq), embedding_dim
    k1, k2, k3 = jax.random.split(key, 3)

    embeddings = jax.random.normal(k1, (B, N, D), dtype=jnp.float32)
    current_node = jax.random.randint(k2, (B,), 0, N, dtype=jnp.int32)

    # nn.Linear(D, D, bias=False) weight, uniform(-1/sqrt(D), 1/sqrt(D)) init
    bound = 1.0 / (D ** 0.5)
    w = jax.random.uniform(k3, (D, D), minval=-bound, maxval=bound, dtype=jnp.float32)

    out = pdp_context_forward(embeddings, current_node, w)
    out = jax.block_until_ready(out)

    # pure-JAX reference of the PyTorch semantics
    gathered = embeddings[jnp.arange(B), current_node]   # (B, D) == gather + squeeze
    ref = gathered @ w.T                                  # project_context (no bias)

    assert out.shape == (B, D)
    # bf16 MXU inputs with f32 accumulation: ~1e-2 relative error expected.
    assert jnp.allclose(out, ref, atol=2e-2, rtol=2e-2)
    print("KERNEL_OK")
</pallas_src>

<mosaic_0001>
module attributes {stable_mosaic.version = 11 : i64} {
  func.func @pdp_context_kernel(%arg0: i32, %arg1: memref<2x128xbf16, #tpu.memory_space<vmem>>, %arg2: memref<128x128xbf16, #tpu.memory_space<vmem>>, %arg3: memref<2x128xf32, #tpu.memory_space<vmem>>) attributes {dimension_semantics = [#tpu.dimension_semantics<parallel>], iteration_bounds = array<i64: 1>, scalar_prefetch = 0 : i64, scratch_operands = 0 : i64, tpu.core_type = #tpu.core_type<tc>, window_params = [{transform_indices = @transform_0, window_bounds = array<i64: 2, 128>}, {pipeline_mode = #tpu.pipeline_mode<synchronous>, transform_indices = @transform_1, window_bounds = array<i64: 128, 128>}, {transform_indices = @transform_2, window_bounds = array<i64: 2, 128>}]} {
    %c0 = arith.constant 0 : index
    %c0_0 = arith.constant 0 : index
    %0 = vector.load %arg1[%c0, %c0_0] : memref<2x128xbf16, #tpu.memory_space<vmem>>, vector<2x128xbf16>
    %c0_1 = arith.constant 0 : index
    %c0_2 = arith.constant 0 : index
    %1 = vector.load %arg2[%c0_1, %c0_2] : memref<128x128xbf16, #tpu.memory_space<vmem>>, vector<128x128xbf16>
    %cst = arith.constant dense<0.000000e+00> : vector<2x128xf32>
    %2 = tpu.matmul %0, %1, %cst {dimension_numbers = #tpu.dot_dimension_numbers<[1], [1], [0], [0], [0, 0, 1, 0], [], []>} : vector<2x128xbf16>, vector<128x128xbf16>, vector<2x128xf32> -> vector<2x128xf32>
    %c0_3 = arith.constant 0 : index
    %c0_4 = arith.constant 0 : index
    %3 = vector.load %arg3[%c0_3, %c0_4] : memref<2x128xf32, #tpu.memory_space<vmem>>, vector<2x128xf32>
    tpu.vector_store %arg3[%c0_3, %c0_4], %2 {strides = array<i32>} : memref<2x128xf32, #tpu.memory_space<vmem>>, vector<2x128xf32>,
    return
  }
  func.func @transform_0(%arg0: i32) -> (i32, i32) {
    %c0_i32 = arith.constant 0 : i32
    %c0_i32_0 = arith.constant 0 : i32
    return %arg0, %c0_i32 : i32, i32
  }
  func.func @transform_1(%arg0: i32) -> (i32, i32) {
    %c0_i32 = arith.constant 0 : i32
    %c0_i32_0 = arith.constant 0 : i32
    %c0_i32_1 = arith.constant 0 : i32
    return %c0_i32, %c0_i32_0 : i32, i32
  }
  func.func @transform_2(%arg0: i32) -> (i32, i32) {
    %c0_i32 = arith.constant 0 : i32
    %c0_i32_0 = arith.constant 0 : i32
    return %arg0, %c0_i32 : i32, i32
  }
}

</mosaic_0001>

<bundles_post_ra>
// kernel: pdp_context_forward.1
= control target key start
LH: loop header
LB: loop body
LE: loop exit
PB: predicated region body
PF: predicated region fallthrough
CT: control target
= control target key end

     0   :  { %v205_v1 = vmov 0.0   ;;  %vm206_vm0 = vmmov 0   ;;  %s262_s0 = inlined_call_operand.vmem [shape: bf16[2,128], index: 0, kind: input, shape index: {}]   ;;  %s263_s1 = inlined_call_operand.vmem [shape: bf16[128,128], index: 1, kind: input, shape index: {}]   ;;  %s264_s2 = inlined_call_operand.hbm [shape: f32[2,128], index: 2, kind: output, shape index: {}]  }
   0x1   :  { %v173_v0 = vld [vmem:[%s263_s1] sm:$0xff]   ;;  %150 = vmatprep.subr.bf16.mxu0 %v205_v1  ;;  %166 = vmatprep.mubr.msk.bf16.mxu0 %vm206_vm0, %v205_v1  ;;  %v174_v2 = vld [vmem:[%s263_s1 + $0x8] sm:$0xff]  }
   0x2   :  { %151 = vmatpush3.bf16.xpose.msra.mxu0 %v173_v0 }
   0x3   :  { %152 = vmatprep.subr.bf16.mxu0 %v205_v1 }
   0x4   :  { %7 = vsyncpa [#allocation3], 0  ;;  %v175_v3 = vld [vmem:[%s263_s1 + $0x10] sm:$0xff]   ;;  %v176_v4 = vld [vmem:[%s263_s1 + $0x18] sm:$0xff]   ;;  %s207_s27 = smov [#allocation2]  }
   0x5   :  { %v177_v5 = vld [vmem:[%s263_s1 + $0x20] sm:$0xff]   ;;  %v178_v6 = vld [vmem:[%s263_s1 + $0x28] sm:$0xff]   ;;  %v179_v7 = vld [vmem:[%s263_s1 + $0x30] sm:$0xff]   ;;  %s125_s28 = sshll.u32 %s207_s27, 4  ;;  %s126_s28 = int_to_ptr.vmem [resolvable:$true] %s125_s28 }
   0x6   :  { %v180_v8 = vld [vmem:[%s263_s1 + $0x38] sm:$0xff]   ;;  %v13_v9 = vld [vmem:[%s262_s0] sm:$0x1]  ;;  %s181_s29 = scalar_lea.vmem %s126_s28, 32  ;;  %p186_p1 = scmp.lt.s32.totalorder %s126_s28, %s126_s28 }
   0x7   :  { %p182_p0 = scmp.ne.s32.totalorder %s126_s28, %s181_s29  ;;  %p187_p2 = scmp.lt.s32.totalorder %s181_s29, %s181_s29 }
   0x9   :  { %p188_p3 = por %p187_p2, %p186_p1 }
   0xa   :  { %153 = vmatpush3.bf16.xpose.msra.mxu0 %v174_v2 }
   0xb   :  { %154 = vmatprep.subr.bf16.mxu0 %v205_v1  ;;  %p189_p4 = pnand %p188_p3, %p182_p0 }
  0x12   :  { %155 = vmatpush3.bf16.xpose.msra.mxu0 %v175_v3 }
  0x13   :  { %156 = vmatprep.subr.bf16.mxu0 %v205_v1 }
  0x1a   :  { %157 = vmatpush3.bf16.xpose.msra.mxu0 %v176_v4 }
  0x1b   :  { %158 = vmatprep.subr.bf16.mxu0 %v205_v1 }
  0x22   :  { %159 = vmatpush3.bf16.xpose.msra.mxu0 %v177_v5 }
  0x23   :  { %160 = vmatprep.subr.bf16.mxu0 %v205_v1 }
  0x2a   :  { %161 = vmatpush3.bf16.xpose.msra.mxu0 %v178_v6 }
  0x2b   :  { %162 = vmatprep.subr.bf16.mxu0 %v205_v1 }
  0x32   :  { %163 = vmatpush3.bf16.xpose.msra.mxu0 %v179_v7 }
  0x33   :  { %164 = vmatprep.subr.bf16.mxu0 %v205_v1 }
  0x3a   :  { %165 = vmatpush3.bf16.xpose.msra.mxu0 %v180_v8 }
  0x41   :  { %167 = vmatmul.mubr.bf16.vlgmr.msra.gmra.mrb[0].mxu0 %v13_v9 }
 0x114   :  { %v112_v10 = vpop.f32.mrb[0].mxu0 }
 0x115   :  { %118 = vst [vmem:[#allocation2] sm:$0x3] %v112_v10  ;;  %v168_v11 = vpop.f32.mrb[1].mxu0 }
 0x116   :  { %v115_v12 = vpop.f32.mrb[2].mxu0 }
 0x117   :  { %192 = shalt.err (!%p189_p4)
}
 0x118   :  { %s193_s3 = scalar_lea.hbm %s264_s2, 32 }
 0x119   :  { %p194_p5 = scmp.ne.s32.totalorder %s264_s2, %s193_s3  ;;  %p197_p6 = scmp.lt.u32.totalorder %s193_s3, %s264_s2 }
 0x11b   :  { %p199_p7 = pnand %p197_p6, %p194_p5 }
 0x11d   :  { %202 = shalt.err (!%p199_p7)
}
 0x11e   :  { %128 = dma.vmem_to_hbm [thread:$0]  %s126_s28, 32, %s264_s2, [#allocation3]   ;;  %v169_v13 = vpop.f32.mrb[3].mxu0 }
 0x11f   :  { %203 = dma.done.wait [#allocation3], 32  }
 0x120   :  { %204 = vsyncadd [#allocation3], 4294967264 }
 0x121   :  { %132 = vsyncpa [#allocation3], 1 }

</bundles_post_ra>
